<compile_context>
chip_gen: v7x
topology: tpu7x:2x2x1
jax: 0.10.0
libtpu: 0.0.40
codegen_flags: <defaults>
</compile_context>

<pallas_src>
import functools

import jax
import jax.numpy as jnp
from jax.experimental import pallas as pl
from jax.experimental.pallas import tpu as pltpu

GAMMA = 12.0
EPSILON = 2.0
PI = 3.141592653589793
SQRT2 = 1.4142135623730951

# Batch-tile target (f32, D=128): 2 slabs x 2 pipeline buffers x 4096*128*4 B = 8 MiB of
# double-buffered input plus a few [block_b, D] f32 temporaries -- comfortably inside the
# 48 MiB scoped-VMEM limit requested below and under v7x's 64 MiB physical VMEM.
DEFAULT_BLOCK_B = 4096
VMEM_LIMIT_BYTES = 48 * 1024 * 1024


def _round_up(x, m):
    return ((x + m - 1) // m) * m


def _pick_block_b(batch, target=DEFAULT_BLOCK_B):
    """Pick a batch tile: as large as possible (amortizes the ~0.35us/step pipeline
    overhead, which matters most on v7x's fast HBM) while keeping >= 4 grid steps
    (>= 2 per TensorCore under dimension_semantics=('parallel',)) when the batch allows."""
    per_step = _round_up(max(pl.cdiv(batch, 4), 8), 8)
    return max(8, min(target, per_step))


def _rotate_scores(h, t, relw, *, gamma, emb_range):
    """Per-row RotatE score for one batch tile.

    h, t: [TB, D] (re_head == im_head == h; re_tail == im_tail == t).
    relw: [1, D] relation embedding row.
    Returns a 1-D [TB] vector of scores (relaid out lane-dense at the store).
    """
    h = h.astype(jnp.float32)
    t = t.astype(jnp.float32)
    relw = relw.astype(jnp.float32)

    eps = 1e-8
    hh = h * h                                   # reused for both the norms and the distance
    tt = t * t
    ht = h * t
    dot = jnp.sum(ht, axis=-1, keepdims=True)    # [TB, 1]
    nh2 = jnp.sum(hh, axis=-1, keepdims=True)
    nt2 = jnp.sum(tt, axis=-1, keepdims=True)

    # edge = trunc(cosine_similarity(h, t)) == 0
    #   <=>  |dot| / max(||h||*||t||, eps) < 1
    #   <=>  dot^2 < max(||h||^2 * ||t||^2, eps^2)
    # (torch.cosine_similarity clamps the denominator ||h||*||t|| with eps; clamping the
    #  squared product with eps^2 is the same clamp.  Only near-zero vectors could differ.)
    is_zero = (dot * dot) < jnp.maximum(nh2 * nt2, eps * eps)    # [TB, 1]

    # Relation trig hoisted to the single [1, D] row: phase = relation / (emb_range / pi).
    phase = relw * (PI / emb_range)
    two_cos = 2.0 * jnp.cos(phase)                               # [1, D]

    # TODO(synk): PyTorch would raise an index error for edge != 0 (exactly (anti-)parallel
    # head/tail); the kernel substitutes the zero relation (phase 0 => cos = 1) instead.
    twoc = jnp.where(is_zero, two_cos, 2.0)                      # [TB, D] via broadcast

    # re^2 + im^2 with re = h*(cos - sin) - t, im = h*(cos + sin) - t collapses to
    #   2 * (h^2 + t^2 - 2*h*t*cos); clamp at 0 (cancellation) before the sqrt and fold
    # the sqrt(2) into the final scale.
    arg = jnp.maximum(hh + tt - ht * twoc, 0.0)
    row = jnp.sum(jnp.sqrt(arg), axis=-1)                        # [TB]
    return gamma - SQRT2 * row


def rotate_slab_kernel(head_ref, tail_ref, relw_ref, out_ref, *, gamma, emb_range):
    """head/tail read as two strided slabs of the same [B, 3D] HBM array (lane-aligned D)."""
    out_ref[0, 0, :] = _rotate_scores(head_ref[...], tail_ref[...], relw_ref[...],
                                      gamma=gamma, emb_range=emb_range)


def rotate_row_kernel(row_ref, relw_ref, out_ref, *, gamma, emb_range, feature_dim):
    """Lane-unaligned D: read the full [TB, 3D] row block and slice head/tail in-kernel."""
    d = feature_dim
    out_ref[0, 0, :] = _rotate_scores(row_ref[:, 0:d], row_ref[:, 2 * d:3 * d],
                                      relw_ref[...], gamma=gamma, emb_range=emb_range)


def kge_rotate_forward(sample, rel_weight, *, gamma=GAMMA, block_b=None):
    """sample: [B, 3, D] float (f32 or bf16); rel_weight: [1, D] (nn.Embedding(1, D) weight).

    Returns the RotatE 'single'-mode score, shape [B] float32.
    """
    B, three, D = sample.shape
    assert three == 3, "sample must be a batch of (head, relation, tail) feature triples"
    emb_range = (gamma + EPSILON) / D

    if block_b is None:
        block_b = _pick_block_b(B)
    block_b = max(8, _round_up(min(block_b, _round_up(B, 8)), 8))
    num_tiles = pl.cdiv(B, block_b)
    Bp = num_tiles * block_b

    # Free (contiguous) reshape: [B, 3, D] -> [B, 3*D].  No wrapper-side head/tail slices:
    # those would cost a full extra HBM read+write pass before the kernel even starts.
    sample2d = sample.reshape(B, 3 * D)
    if Bp != B:
        sample2d = jnp.pad(sample2d, ((0, Bp - B), (0, 0)))   # padded rows sliced off below

    rel_spec = pl.BlockSpec((1, D), lambda i: (0, 0))
    out_spec = pl.BlockSpec((1, 1, block_b), lambda i: (i, 0, 0))   # lane-dense score rows

    if D % 128 == 0:
        kern = functools.partial(rotate_slab_kernel, gamma=gamma, emb_range=emb_range)
        in_specs = [
            pl.BlockSpec((block_b, D), lambda i: (i, 0)),   # head slab: cols [0, D)
            pl.BlockSpec((block_b, D), lambda i: (i, 2)),   # tail slab: cols [2D, 3D)
            rel_spec,
        ]
        args = (sample2d, sample2d, rel_weight)
    else:
        # Read the whole row block (33% extra bytes) rather than slicing in the wrapper.
        kern = functools.partial(rotate_row_kernel, gamma=gamma, emb_range=emb_range,
                                 feature_dim=D)
        in_specs = [pl.BlockSpec((block_b, 3 * D), lambda i: (i, 0)), rel_spec]
        args = (sample2d, rel_weight)

    out = pl.pallas_call(
        kern,
        out_shape=jax.ShapeDtypeStruct((num_tiles, 1, block_b), jnp.float32),
        grid=(num_tiles,),
        in_specs=in_specs,
        out_specs=out_spec,
        compiler_params=pltpu.CompilerParams(
            dimension_semantics=("parallel",),          # megacore / v7x 2-TC batch sharding
            vmem_limit_bytes=VMEM_LIMIT_BYTES,
        ),
    )(*args)
    return out.reshape(-1)[:B]                          # [B], matching PyTorch's score shape


def _reference(sample, rel_weight, gamma=GAMMA):
    """Pure-JAX mirror of the PyTorch forward (RotatE, mode='single') for verification."""
    h = sample[:, 0, :].astype(jnp.float32)
    t = sample[:, 2, :].astype(jnp.float32)
    D = h.shape[-1]
    eps = 1e-8
    cos = jnp.sum(h * t, -1) / jnp.maximum(
        jnp.linalg.norm(h, axis=-1) * jnp.linalg.norm(t, axis=-1), eps)
    idx = cos.astype(jnp.int32)
    rel = jnp.where(idx[:, None] == 0, rel_weight[0][None, :].astype(jnp.float32), 0.0)
    emb_range = (gamma + EPSILON) / D
    phase = rel / (emb_range / PI)
    re_r, im_r = jnp.cos(phase), jnp.sin(phase)
    re_s = h * re_r - h * im_r - t
    im_s = h * im_r + h * re_r - t
    return gamma - jnp.sum(jnp.sqrt(re_s ** 2 + im_s ** 2), axis=-1)


if __name__ == "__main__":
    B = 20     # small batch: 3 grid tiles of 8 rows, 4 padded rows exercised
    D = 128    # feature_dim (lane-aligned)

    key = jax.random.PRNGKey(0)
    k_sample, k_rel = jax.random.split(key)
    # sample: batch of (head, relation-id-placeholder, tail) feature triples, [B, 3, D]
    sample = jax.random.normal(k_sample, (B, 3, D), dtype=jnp.float32)
    # relation_embedding = nn.Embedding(1, feature_dim) weight
    rel_weight = jax.random.normal(k_rel, (1, D), dtype=jnp.float32)

    score = kge_rotate_forward(sample, rel_weight)
    score = jax.block_until_ready(score)

    ref = _reference(sample, rel_weight)
    assert score.shape == (B,)
    assert jnp.allclose(score, ref, atol=1e-3, rtol=1e-3), (score, ref)

    print("KERNEL_OK")
</pallas_src>

<mosaic_0001>
module attributes {stable_mosaic.version = 11 : i64} {
  func.func @rotate_slab_kernel(%arg0: i32, %arg1: memref<8x128xf32, #tpu.memory_space<vmem>>, %arg2: memref<8x128xf32, #tpu.memory_space<vmem>>, %arg3: memref<1x128xf32, #tpu.memory_space<vmem>>, %arg4: memref<1x1x8xf32, #tpu.memory_space<vmem>>) attributes {dimension_semantics = [#tpu.dimension_semantics<parallel>], iteration_bounds = array<i64: 3>, scalar_prefetch = 0 : i64, scratch_operands = 0 : i64, tpu.core_type = #tpu.core_type<tc>, window_params = [{transform_indices = @transform_0, window_bounds = array<i64: 8, 128>}, {transform_indices = @transform_1, window_bounds = array<i64: 8, 128>}, {pipeline_mode = #tpu.pipeline_mode<synchronous>, transform_indices = @transform_2, window_bounds = array<i64: 1, 128>}, {transform_indices = @transform_3, window_bounds = array<i64: 1, 1, 8>}]} {
    %c0 = arith.constant 0 : index
    %c0_0 = arith.constant 0 : index
    %0 = vector.load %arg1[%c0, %c0_0] : memref<8x128xf32, #tpu.memory_space<vmem>>, vector<8x128xf32>
    %c0_1 = arith.constant 0 : index
    %c0_2 = arith.constant 0 : index
    %1 = vector.load %arg2[%c0_1, %c0_2] : memref<8x128xf32, #tpu.memory_space<vmem>>, vector<8x128xf32>
    %c0_3 = arith.constant 0 : index
    %c0_4 = arith.constant 0 : index
    %2 = vector.load %arg3[%c0_3, %c0_4] : memref<1x128xf32, #tpu.memory_space<vmem>>, vector<1x128xf32>
    %3 = arith.mulf %0, %0 : vector<8x128xf32>
    %4 = arith.mulf %1, %1 : vector<8x128xf32>
    %5 = arith.mulf %0, %1 : vector<8x128xf32>
    %cst = arith.constant dense<0.000000e+00> : vector<8xf32>
    %6 = vector.multi_reduction <add>, %5, %cst [1] : vector<8x128xf32> to vector<8xf32>
    %7 = vector.shape_cast %6 : vector<8xf32> to vector<8x1xf32>
    %cst_5 = arith.constant dense<0.000000e+00> : vector<8xf32>
    %8 = vector.multi_reduction <add>, %3, %cst_5 [1] : vector<8x128xf32> to vector<8xf32>
    %9 = vector.shape_cast %8 : vector<8xf32> to vector<8x1xf32>
    %cst_6 = arith.constant dense<0.000000e+00> : vector<8xf32>
    %10 = vector.multi_reduction <add>, %4, %cst_6 [1] : vector<8x128xf32> to vector<8xf32>
    %11 = vector.shape_cast %10 : vector<8xf32> to vector<8x1xf32>
    %12 = arith.mulf %7, %7 : vector<8x1xf32>
    %13 = arith.mulf %9, %11 : vector<8x1xf32>
    %cst_7 = arith.constant 1.000000e-16 : f32
    %14 = vector.broadcast %cst_7 : f32 to vector<8x1xf32>
    %15 = arith.maximumf %13, %14 : vector<8x1xf32>
    %16 = arith.cmpf olt, %12, %15 : vector<8x1xf32>
    %cst_8 = arith.constant 28.7231331 : f32
    %17 = vector.broadcast %cst_8 : f32 to vector<1x128xf32>
    %18 = arith.mulf %2, %17 : vector<1x128xf32>
    %19 = math.cos %18 : vector<1x128xf32>
    %cst_9 = arith.constant 2.000000e+00 : f32
    %20 = vector.broadcast %cst_9 : f32 to vector<1x128xf32>
    %21 = arith.mulf %20, %19 : vector<1x128xf32>
    %cst_10 = arith.constant 2.000000e+00 : f32
    %22 = vector.shape_cast %16 : vector<8x1xi1> to vector<8x1xi1>
    %23 = vector.broadcast %22 : vector<8x1xi1> to vector<8x128xi1>
    %24 = vector.shape_cast %21 : vector<1x128xf32> to vector<1x128xf32>
    %25 = vector.broadcast %24 : vector<1x128xf32> to vector<8x128xf32>
    %26 = vector.broadcast %cst_10 : f32 to vector<8x128xf32>
    %27 = arith.select %23, %25, %26 : vector<8x128xi1>, vector<8x128xf32>
    %28 = arith.addf %3, %4 : vector<8x128xf32>
    %29 = arith.mulf %5, %27 : vector<8x128xf32>
    %30 = arith.subf %28, %29 : vector<8x128xf32>
    %cst_11 = arith.constant 0.000000e+00 : f32
    %31 = vector.broadcast %cst_11 : f32 to vector<8x128xf32>
    %32 = arith.maximumf %30, %31 : vector<8x128xf32>
    %33 = math.sqrt %32 : vector<8x128xf32>
    %cst_12 = arith.constant dense<0.000000e+00> : vector<8xf32>
    %34 = vector.multi_reduction <add>, %33, %cst_12 [1] : vector<8x128xf32> to vector<8xf32>
    %cst_13 = arith.constant 1.41421354 : f32
    %35 = vector.broadcast %cst_13 : f32 to vector<8xf32>
    %36 = arith.mulf %35, %34 : vector<8xf32>
    %cst_14 = arith.constant 1.200000e+01 : f32
    %37 = vector.broadcast %cst_14 : f32 to vector<8xf32>
    %38 = arith.subf %37, %36 : vector<8xf32>
    %c0_15 = arith.constant 0 : index
    %c0_16 = arith.constant 0 : index
    %c0_17 = arith.constant 0 : index
    %39 = vector.load %arg4[%c0_15, %c0_16, %c0_17] : memref<1x1x8xf32, #tpu.memory_space<vmem>>, vector<1x1x8xf32>
    %40 = vector.shape_cast %39 : vector<1x1x8xf32> to vector<8xf32>
    %41 = vector.shape_cast %38 : vector<8xf32> to vector<1x1x8xf32>
    tpu.vector_store %arg4[%c0_15, %c0_16, %c0_17], %41 {strides = array<i32>} : memref<1x1x8xf32, #tpu.memory_space<vmem>>, vector<1x1x8xf32>,
    return
  }
  func.func @transform_0(%arg0: i32) -> (i32, i32) {
    %c0_i32 = arith.constant 0 : i32
    %c0_i32_0 = arith.constant 0 : i32
    return %arg0, %c0_i32 : i32, i32
  }
  func.func @transform_1(%arg0: i32) -> (i32, i32) {
    %c2_i32 = arith.constant 2 : i32
    %c0_i32 = arith.constant 0 : i32
    return %arg0, %c2_i32 : i32, i32
  }
  func.func @transform_2(%arg0: i32) -> (i32, i32) {
    %c0_i32 = arith.constant 0 : i32
    %c0_i32_0 = arith.constant 0 : i32
    %c0_i32_1 = arith.constant 0 : i32
    return %c0_i32, %c0_i32_0 : i32, i32
  }
  func.func @transform_3(%arg0: i32) -> (i32, i32, i32) {
    %c0_i32 = arith.constant 0 : i32
    %c0_i32_0 = arith.constant 0 : i32
    %c0_i32_1 = arith.constant 0 : i32
    return %arg0, %c0_i32, %c0_i32_0 : i32, i32, i32
  }
}

</mosaic_0001>

<bundles_post_ra>
// kernel: tpu_custom_call.1
= control target key start
LH: loop header
LB: loop body
LE: loop exit
PB: predicated region body
PF: predicated region fallthrough
CT: control target
= control target key end

     0   :  { %8 = vsyncpa [#allocation3], 0  ;;  %s991_s0 = inlined_call_operand.hbm [shape: f32[24,384], index: 0, kind: input, shape index: {}]   ;;  %s992_s1 = inlined_call_operand.hbm [shape: f32[24,384], index: 1, kind: input, shape index: {}]   ;;  %s993_s2 = inlined_call_operand.vmem [shape: f32[1,128], index: 2, kind: input, shape index: {}]   ;;  %s994_s3 = inlined_call_operand.hbm [shape: f32[3,1,8], index: 3, kind: output, shape index: {}]  }
   0x1   :  { %10 = vsyncpa [#allocation3 + $0x1], 0 }
   0x2   :  { %11 = vsyncpa [#allocation6], 0 }
   0x3   :  { %13 = vsyncpa [#allocation6 + $0x1], 0 }
   0x4   :  { %14 = vsyncpa [#allocation4], 0 }
   0x5   :  { %16 = vsyncpa [#allocation4 + $0x1], 0  ;;  %s731_s12 = smov 0   ;;  %s733_s13 = smov 0  }
   0x6   :  { %s735_s14 = smov 0   ;;  %s737_s15 = smov 0  }
   0x7 LB: > { %s752_s16 = sadd.s32 4294967295, %s700_s15   ;;  %s484_s17 = sadd.s32 4294967294, %s700_s15   ;;  %s700_s15 = sphi %s737_s15, %s1012_s15   ;;  %s696_s14 = sphi %s735_s14, %s1011_s14   ;;  %s692_s13 = sphi %s733_s13, %s1010_s13   ;;  %s688_s12 = sphi %s731_s12, %s1009_s12  }
   0x8   : > { %s756_s18 = sadd.s32 1, %s700_s15   ;;  %s29_s19 = sadd.s32 1, %s696_s14 }
   0x9   : > { %s26_s20 = ssub.s32 %s700_s15, %s756_s18  ;;  %p36_p0 = scmp.ne.s32.totalorder %s696_s14, %s692_s13 }
   0xa   : > { %p27_p1 = scmp.eq.s32.totalorder %s26_s20, 0  ;;  %p37_p2 = scmp.eq.s32.totalorder %s700_s15, 0 }
   0xb   : > { %p42_p3 = scmp.ne.s32.totalorder %s692_s13, %s688_s12  ;;  %p43_p4 = scmp.eq.s32.totalorder %s752_s16, 0 }
   0xc   : > { %s768_s21 = scalar_select %p27_p1, %s696_s14, %s29_s19  }
   0xd   : > { %p770_p5 = por %p37_p2, %p36_p0  ;;  %p774_p6 = por %p43_p4, %p42_p3 }
   0xe   : > { %p113_p7 = scmp.eq.s32.totalorder %s752_s16, 2  ;;  %p119_p8 = scmp.eq.s32.totalorder %s484_s17, 2 }
   0xf   : > { %s998_s23 = scalar_select %p774_p6, 1, 0 }
  0x10   : > { %p523_p9 = scmp.lt.s32.totalorder %s700_s15, 3  ;;  %p780_p10 = por %p113_p7, %p36_p0 }
  0x11   : > { %p784_p11 = por %p119_p8, %p42_p3  ;;  %s789_s26 = sand.u32 1, %s696_s14  }
  0x12   : > { %s999_s24 = scalar_select %p780_p10, 1, 0 }
  0x13   : > { %s1000_s25 = scalar_select %p784_p11, 1, 0 }
  0x14   : > { %s501_s27 = smul.u32 384, %s700_s15  ;;  %s487_s28 = sshll.u32 %s789_s26, 3 }
  0x15   : > { %s146_s5 = scalar_lea.vmem [#allocation2], %s487_s28  ;;  %p804_p12 = pnand %p523_p9, %p770_p5 }
  0x16   : > { %s798_s4 = scalar_lea.hbm %s991_s0, %s501_s27  ;;  %s154_s6 = sshll.u32 %s146_s5, 4  ;;  %s808_s6 = int_to_ptr.vmem [resolvable:$true] %s154_s6 }
  0x17   : > { %s143_s8 = scalar_lea.sflag [#allocation3], %s789_s26  ;;  %s569_s9 = scalar_lea.hbm %s798_s4, 128 }
  0x18   : > { %p570_p1 = scmp.ne.s32.totalorder %s798_s4, %s569_s9  ;;  %p571_p2 = pneg %p804_p12 }
  0x19   : > { %s574_s17 = scalar_lea.hbm %s991_s0, 1152  ;;  %p575_p5 = scmp.lt.u32.totalorder %s798_s4, %s991_s0 }
  0x1a   : > { %p572_p3 = pnand %p571_p2, %p570_p1  ;;  %p576_p7 = scmp.lt.u32.totalorder %s574_s17, %s569_s9 }
  0x1b   : > { %p578_p9 = scmp.lt.u32.totalorder %s569_s9, %s798_s4 }
  0x1c   : > { %p573_p4 = pneg %p572_p3  ;;  %p577_p8 = por %p576_p7, %p575_p5 }
  0x1e   : > { %p579_p13 = por %p578_p9, %p577_p8 }
  0x20   : > { %p580_p0 = pnand %p579_p13, %p573_p4 }
  0x22   : > { %583 = shalt.err (!%p580_p0)
}
  0x23   : > { %s584_s22 = scalar_lea.vmem %s808_s6, 128  ;;  %s702_s29 = smov [#allocation2]  }
  0x24   : > { %p585_p1 = scmp.ne.s32.totalorder %s808_s6, %s584_s22  ;;  %s589_s30 = sshll.u32 %s702_s29, 4  ;;  %s590_s30 = int_to_ptr.vmem [resolvable:$false] %s589_s30 }
  0x25   : > { %s591_s5 = scalar_lea.vmem %s590_s30, 256  ;;  %p592_p10 = scmp.lt.s32.totalorder %s808_s6, %s590_s30 }
  0x26   : > { %p587_p3 = pnand %p585_p1, %p571_p2  ;;  %p593_p5 = scmp.lt.s32.totalorder %s591_s5, %s584_s22 }
  0x28   : > { %p588_p11 = pneg %p587_p3  ;;  %p594_p7 = por %p593_p5, %p592_p10 }
  0x2a   : > { %p595_p8 = pnand %p594_p7, %p588_p11 }
  0x2c   : > { %598 = shalt.err (!%p595_p8)
}
  0x2d   : > { %515 = dma.hbm_to_vmem [thread:$0]  (!%p804_p12), %s798_s4, 128, %s808_s6, %s143_s8  }
  0x2e   : > { %p1002_p13 = scmp.lt.s32.totalorder %s700_s15, 4  ;;  %p1003_p0 = scmp.ge.s32.totalorder %s700_s15, 1 }
  0x2f   : > { %s429_s17 = scalar_lea.hbm %s992_s1, %s501_s27  ;;  %s165_s20 = scalar_lea.vmem [#allocation5], %s487_s28 }
  0x30   : > { %p842_p4 = pnand %p1003_p0, %p1002_p13  ;;  %s851_s19 = scalar_lea.hbm %s429_s17, 256 }
  0x31   : > { %s174_s22 = sshll.u32 %s165_s20, 4  ;;  %s162_s4 = scalar_lea.sflag [#allocation6], %s789_s26  ;;  %s175_s22 = int_to_ptr.vmem [resolvable:$true] %s174_s22 }
  0x32   : > { %s1004_s9 = scalar_select %p842_p4, 1, 0 }
  0x33   : > { %s629_s6 = scalar_lea.hbm %s429_s17, 384  ;;  %s604_s27 = scalar_lea.hbm %s992_s1, 1152 }
  0x34   : > { %p600_p10 = scmp.ne.s32.totalorder %s851_s19, %s629_s6  ;;  %p605_p1 = scmp.lt.u32.totalorder %s851_s19, %s992_s1 }
  0x35   : > { %p606_p3 = scmp.lt.u32.totalorder %s604_s27, %s629_s6  ;;  %p608_p7 = scmp.lt.u32.totalorder %s629_s6, %s851_s19 }
  0x36   : > { %p602_p11 = pnand %p600_p10, %p571_p2 }
  0x37   : > { %p607_p5 = por %p606_p3, %p605_p1 }
  0x38   : > { %p603_p9 = pneg %p602_p11 }
  0x39   : > { %p609_p8 = por %p608_p7, %p607_p5 }
  0x3b   : > { %p610_p13 = pnand %p609_p8, %p603_p9 }
  0x3d   : > { %613 = shalt.err (!%p610_p13)
}
  0x3e   : > { %s614_s26 = scalar_lea.vmem %s175_s22, 128  ;;  %s703_s28 = smov [#allocation5]  }
  0x3f   : > { %p615_p0 = scmp.ne.s32.totalorder %s175_s22, %s614_s26  ;;  %s619_s10 = sshll.u32 %s703_s28, 4  ;;  %s620_s10 = int_to_ptr.vmem [resolvable:$false] %s619_s10 }
  0x40   : > { %s621_s11 = scalar_lea.vmem %s620_s10, 256  ;;  %p622_p6 = scmp.lt.s32.totalorder %s175_s22, %s620_s10 }
  0x41   : > { %p617_p10 = pnand %p615_p0, %p571_p2  ;;  %p623_p4 = scmp.lt.s32.totalorder %s621_s11, %s614_s26 }
  0x43   : > { %p618_p11 = pneg %p617_p10  ;;  %p624_p1 = por %p623_p4, %p622_p6 }
  0x45   : > { %p625_p3 = pnand %p624_p1, %p618_p11 }
  0x47   : > { %628 = shalt.err (!%p625_p3)
}
  0x48   : > { %518 = dma.hbm_to_vmem [thread:$0]  (!%p804_p12), %s851_s19, 128, %s175_s22, %s162_s4  }
  0x49   : > { %p1005_p9 = scmp.ne.s32.totalorder %s1004_s9, 0 }
  0x4a   : > { %s877_s17 = sand.u32 (!%p1005_p9), 1, %s692_s13   ;;  %p1006_p2 = scmp.ne.s32.totalorder (!%p1005_p9), %s998_s23, 0 }
  0x4b   : > { %183 = sbr.rel (%p1005_p9) target bundleno = 423 (0x1a7), region = 32  ;;  %s492_s20 = sshll.u32 (!%p1005_p9), %s877_s17, 3 }
  0x4c   : > { %s186_s6 = scalar_lea.sflag (!%p1005_p9), [#allocation3], %s877_s17  ;;  %s189_s8 = scalar_lea.vmem (!%p1005_p9), [#allocation2], %s492_s20 }
  0x52   : > { %675 = dma.done.wait (%p1006_p2), %s186_s6, 128  }
  0x53   : > { %677 = vsyncadd (%p1006_p2), %s186_s6, 4294967168  ;;  %s195_s7 = scalar_lea.sflag [#allocation6], %s877_s17  ;;  %s198_s19 = scalar_lea.vmem [#allocation5], %s492_s20 }
  0x54   : > { %679 = dma.done.wait (%p1006_p2), %s195_s7, 128  }
  0x55   : > { %681 = vsyncadd (%p1006_p2), %s195_s7, 4294967168  ;;  %v225_v0 = vld [vmem:[%s189_s8] sm:$0xff]  ;;  %v226_v1 = vld [vmem:[%s198_s19] sm:$0xff]  ;;  %v704_v17 = vmov 683565275   ;;  %v349_v62 = vlaneseq  ;;  %s498_s23 = sshll.u32 %s752_s16, 4 }
  0x56   : > { %v227_v2 = vld [vmem:[%s993_s2] sm:$0x1]  ;;  %v228_v3 = vmul.f32 %v225_v0, %v225_v0  ;;  %v229_v4 = vmul.f32 %v226_v1, %v226_v1  ;;  %v893_v5 = vmul.f32 %v226_v1, %v225_v0  ;;  %v705_v19 = vmov 2475754826   ;;  %s224_s4 = scalar_lea.vmem [#allocation7], %s877_s17  ;;  %s948_s5 = scalar_lea.hbm %s994_s3, %s498_s23 }
  0x57   : > { %v895_v6 = vmul.f32 28.723133, %v227_v2  ;;  %v706_v21 = vmov 2131351028   ;;  %v707_v24 = vmov 2102212464  }
  0x58   : > { %233 = vadd.xlane.f32.xlu0 %v228_v3  ;;  %v897_v7 = vadd.f32 %v229_v4, %v228_v3  ;;  %231 = vadd.xlane.f32.xlu1 %v893_v5  ;;  %v708_v26 = vmov 920167782   ;;  %v709_v32 = vmov 1326507024   ;;  %v925_v0 = vshrl.u32 %v349_v62, 7  ;;  %s393_s29 = sshll.u32 %s224_s4, 4  ;;  %s950_s29 = int_to_ptr.vmem [resolvable:$true] %s393_s29 }
  0x59   : > { %v245_v8 = vand.u32 2139095040, %v895_v6  ;;  %v242_v12 = vand.u32 2147483647, %v895_v6  ;;  %v927_v1 = vand.u32 127, %v349_v62  ;;  %vm244_vm7 = vcmp.lt.s32.totalorder %v895_v6, 0  ;;  %s381_s16 = scalar_lea.sflag [#allocation4], %s877_s17 }
  0x5a   : > { %vm334_vm12 = vweird.f32 %v895_v6  ;;  %s630_s26 = scalar_lea.vmem %s950_s29, 16  ;;  %p1007_p12 = scmp.ne.s32.totalorder %s999_s24, 0 }
  0x5b   : > { %v246_v9 = vshrl.u32 %v245_v8, 23  ;;  %v249_v23 = vand.u32 8388607, %v242_v12  ;;  %v375_v2 = vsub.s32 %v927_v1, %v925_v0  ;;  %vm243_vm8 = vcmp.le.f32.partialorder %v242_v12, 0.7853982  ;;  %p631_p6 = scmp.ne.s32.totalorder %s950_s29, %s630_s26  ;;  %s710_s28 = smov [#allocation7]  }
  0x5c   : > { %235 = vadd.xlane.f32.xlu0 %v229_v4  ;;  %s634_s10 = sshll.u32 %s710_s28, 4  ;;  %s635_s10 = int_to_ptr.vmem [resolvable:$false] %s634_s10 }
  0x5d   : > { %v494_v10 = vadd.s32 4294967169, %v246_v9  ;;  %v250_v37 = vor.u32 8388608, %v249_v23  ;;  %p632_p4 = pnand %p631_p6, %p1007_p12  ;;  %s636_s11 = scalar_lea.vmem %s635_s10, 32 }
  0x5e   : > { %p637_p7 = scmp.lt.s32.totalorder %s950_s29, %s635_s10  ;;  %p638_p8 = scmp.lt.s32.totalorder %s636_s11, %s630_s26 }
  0x5f   : > { %v252_v11 = vadd.s32 1, %v494_v10  ;;  %v290_v46 = vshll.u32 %v250_v37, 8  ;;  %p633_p5 = pneg %p632_p4 }
  0x60   : > { %p639_p13 = por %p638_p8, %p637_p7 }
  0x61   : > { %vm253_vm0 = vcmp.gt.s32.totalorder %v252_v11, 0 }
  0x62   : > { %v254_v13 = vsel %vm253_vm0, %v252_v11, 0  ;;  %vm378_vm0 = vcmask 57344   ;;  %p640_p0 = pnand %p639_p13, %p633_p5 }
  0x63   : > { %v256_v14 = vand.u32 31, %v254_v13  ;;  %v255_v15 = vshrl.u32 %v254_v13, 5 }
  0x65   : > { %v257_v16 = vsub.s32 32, %v256_v14  ;;  %v259_v18 = vshll.u32 %v704_v17, %v256_v14  ;;  %v262_v20 = vshll.u32 %v705_v19, %v256_v14  ;;  %v265_v22 = vshll.u32 %v706_v21, %v256_v14 }
  0x66   : > { %v268_v25 = vshll.u32 %v707_v24, %v256_v14  ;;  %v271_v27 = vshll.u32 %v708_v26, %v256_v14  ;;  %vm274_vm1 = vcmp.lt.s32.totalorder %v255_v15, 1  ;;  %vm277_vm2 = vcmp.lt.s32.totalorder %v255_v15, 4 }
  0x67   : > { %v260_v28 = vshrl.u32 %v705_v19, %v257_v16  ;;  %v263_v29 = vshrl.u32 %v706_v21, %v257_v16  ;;  %v266_v30 = vshrl.u32 %v707_v24, %v257_v16  ;;  %v269_v31 = vshrl.u32 %v708_v26, %v257_v16 }
  0x68   : > { %v272_v33 = vshrl.u32 %v709_v32, %v257_v16  ;;  %vm276_vm3 = vcmp.lt.s32.totalorder %v255_v15, 3  ;;  %vm275_vm4 = vcmp.lt.s32.totalorder %v255_v15, 2  ;;  %v258_v51 = vshrl.u32 %v704_v17, %v257_v16 }
  0x69   : > { %v261_v34 = vor.u32 %v260_v28, %v259_v18  ;;  %v264_v35 = vor.u32 %v263_v29, %v262_v20  ;;  %v267_v36 = vor.u32 %v266_v30, %v265_v22  ;;  %v270_v38 = vor.u32 %v269_v31, %v268_v25 }
  0x6a   : > { %v273_v39 = vor.u32 %v272_v33, %v271_v27 }
  0x6b   : > { %v282_v40 = vsel %vm274_vm1, %v261_v34, %v264_v35  ;;  %v283_v41 = vsel %vm277_vm2, %v270_v38, 920167782  ;;  %v286_v44 = vsel %vm274_vm1, %v264_v35, %v267_v36  ;;  %v279_v54 = vsel %vm277_vm2, %v267_v36, 2102212464 }
  0x6c   : > { %v287_v42 = vsel %vm277_vm2, %v273_v39, 1326507024  ;;  %v284_v43 = vsel %vm276_vm3, %v267_v36, %v283_v41  ;;  %v278_v55 = vsel %vm274_vm1, %v258_v51, %v261_v34  ;;  %v280_v56 = vsel %vm276_vm3, %v264_v35, %v279_v54 }
  0x6d   : > { %v288_v45 = vsel %vm276_vm3, %v270_v38, %v287_v42  ;;  %v285_v47 = vsel %vm275_vm4, %v282_v40, %v284_v43  ;;  %v281_v57 = vsel %vm275_vm4, %v278_v55, %v280_v56  ;;  %v351_v43 = vsub.s32 0, %v925_v0 }
  0x6e   : > { %v289_v48 = vsel %vm275_vm4, %v286_v44, %v288_v45  ;;  %v912_v49 = vmul.u32.u64.low %v290_v46, %v285_v47  ;;  %v913_v50 = vmul.u32.u64.high %v290_v46, %v285_v47, %v912_v49  ;;  %v297_v59 = vmul.u32 %v290_v46, %v281_v57 }
  0x6f   : > { %v915_v52 = vmul.u32.u64.low %v290_v46, %v289_v48  ;;  %v916_v53 = vmul.u32.u64.high %v290_v46, %v289_v48, %v915_v52 }
  0x70   : > { %v300_v58 = vadd.s32 1, %v913_v50 }
  0x71   : > { %vm299_vm5 = vc.u32 %v916_v53, %v912_v49  ;;  %v298_v16 = vadd.s32 %v912_v49, %v916_v53 }
  0x72   : > { %v301_v60 = vsel %vm299_vm5, %v300_v58, %v913_v50 }
  0x73   : > { %v302_v61 = vadd.s32 %v301_v60, %v297_v59 }
  0x75   : > { %v303_v63 = vadd.s32 536870912, %v302_v61 }
  0x77   : > { %v304_v3 = vshrl.u32 %v303_v63, 30 }
  0x79   : > { %v305_v4 = vshll.u32 %v304_v3, 30  ;;  %v328_v30 = vsub.s32 4, %v304_v3 }
  0x7b   : > { %v306_v8 = vsub.s32 %v302_v61, %v305_v4  ;;  %v329_v31 = vsel %vm244_vm7, %v328_v30, %v304_v3 }
  0x7c   : > { %v331_v32 = vsel %vm243_vm8, 0, %v329_v31 }
  0x7d   : > { %v308_v9 = vsub.s32 0, %v306_v8  ;;  %v335_v35 = vand.u32 3, %v331_v32 }
  0x7f   : > { %v495_v10 = vmin.u32 %v308_v9, %v306_v8  ;;  %vm337_vm9 = vcmp.eq.s32.totalorder %v335_v35, 0  ;;  %vm340_vm10 = vcmp.eq.s32.totalorder %v335_v35, 2  ;;  %vm336_vm11 = vcmp.lt.s32.totalorder %v335_v35, 2 }
  0x81   : > { %v310_v11 = vclz %v495_v10 }
  0x83   : > { %v496_v13 = vadd.s32 4294967294, %v310_v11 }
  0x85   : > { %vm497_vm6 = vcmp.lt.s32.totalorder %v496_v13, 0 }
  0x86   : > { %v313_v14 = vsel %vm497_vm6, 0, %v496_v13 }
  0x87   : > { %v318_v15 = vsub.s32 4294967266, %v313_v14  ;;  %v314_v17 = vsub.s32 32, %v313_v14  ;;  %v315_v19 = vshll.u32 %v306_v8, %v313_v14 }
  0x89   : > { %v319_v18 = vadd.s32 127, %v318_v15  ;;  %v316_v20 = vshrl.u32 %v298_v16, %v314_v17 }
  0x8b   : > { %v320_v21 = vshll.u32 %v319_v18, 23  ;;  %v317_v22 = vor.u32 %v316_v20, %v315_v19 }
  0x8d   : > { %v321_v23 = vor.u32 4788187, %v320_v21  ;;  %v324_v25 = vcvt.s32.f32 %v317_v22 }
  0x8f   : > { %v322_v24 = vand.u32 2147483647, %v321_v23 }
  0x91   : > { %v325_v26 = vmul.f32 %v324_v25, %v322_v24 }
  0x93   : > { %v326_v27 = vxor.u32 2147483648, %v325_v26 }
  0x95   : > { %v327_v28 = vsel %vm244_vm7, %v326_v27, %v325_v26 }
  0x96   : > { %v330_v29 = vsel %vm243_vm8, %v895_v6, %v327_v28 }
  0x97   : > { %563 = vcosq.f32 %v330_v29 }
  0x98   : > { %565 = vsinq.f32 %v330_v29 }
  0xa1   : > { %v564_v33 = vpop.eup %563 }
  0xa2   : > { %v566_v34 = vpop.eup %565  ;;  %v341_v37 = vxor.u32 2147483648, %v564_v33 }
  0xa3   : > { %v338_v36 = vxor.u32 2147483648, %v566_v34 }
  0xa4   : > { %v342_v39 = vsel %vm340_vm10, %v341_v37, %v566_v34 }
  0xa5   : > { %v339_v38 = vsel %vm337_vm9, %v564_v33, %v338_v36 }
  0xa6   : > { %v343_v12 = vsel %vm336_vm11, %v339_v38, %v342_v39 }
  0xa7   : > { %v344_v40 = vsel %vm334_vm12, nan, %v343_v12 }
  0xa8   : > { %v345_v42 = vmul.f32 2.0, %v344_v40 }
  0xaa   : > { %v352_v48 = vrot.slane %v345_v42, %v351_v43 }
  0xe5   : > { %v234_v41 = vpop.xlane.xlu0 %233  ;;  %v232_v44 = vpop.xlane.xlu1 %231 }
  0xe6   : > { %v237_v47 = vmul.f32 %v232_v44, %v232_v44 }
  0xe9   : > { %v236_v45 = vpop.xlane.xlu0 %235 }
  0xea   : > { %v238_v46 = vmul.f32 %v236_v45, %v234_v41 }
  0xec   : > { %v239_v49 = vmax.f32 %v238_v46, 1e-16 }
  0xee   : > { %vm240_vm13 = vcmp.lt.f32.partialorder %v237_v47, %v239_v49 }
  0xef   : > { %v354_v50 = vsel %vm240_vm13, %v352_v48, 2.0 }
  0xf0   : > { %v356_v51 = vmul.f32 %v354_v50, %v893_v5 }
  0xf2   : > { %v357_v6 = vsub.f32 %v897_v7, %v356_v51 }
  0xf4   : > { %v358_v52 = vmax.f32 %v357_v6, 0.0 }
  0xf6   : > { %567 = vrsqrt.f32 %v358_v52  ;;  %vm361_vm14 = vcmp.eq.f32.partialorder %v358_v52, inf  ;;  %v364_v55 = vand.u32 2147483648, %v358_v52  ;;  %vm363_vm15 = vcmp.eq.f32.partialorder %v358_v52, 0.0 }
 0x100   : > { %v568_v53 = vpop.eup %567 }
 0x101   : > { %v360_v54 = vmul.f32 %v568_v53, %v358_v52 }
 0x103   : > { %v362_v56 = vsel %vm361_vm14, %v358_v52, %v360_v54 }
 0x104   : > { %v365_v57 = vsel %vm363_vm15, %v364_v55, %v362_v56 }
 0x105   : > { %366 = vadd.xlane.f32.xlu1 %v365_v57 }
 0x192   : > { %v367_v58 = vpop.xlane.xlu1 %366 }
 0x193   : > { %v368_v59 = vmul.f32 1.4142135, %v367_v58 }
 0x195   : > { %v369_v5 = vsub.f32 12.0, %v368_v59 }
 0x197   : > { %v376_v7 = vrot.slane %v369_v5, %v375_v2 }
 0x199   : > { %379 = vst.msk [vmem:[%s224_s4] sm:$0x1] %vm378_vm0, %v376_v7 }
 0x19a   : > { %643 = shalt.err (!%p640_p0)
}
 0x19b   : > { %s644_s17 = scalar_lea.hbm %s948_s5, 16  ;;  %s648_s8 = scalar_lea.hbm %s994_s3, 48 }
 0x19c   : > { %p645_p10 = scmp.ne.s32.totalorder %s948_s5, %s644_s17  ;;  %p649_p3 = scmp.lt.u32.totalorder %s948_s5, %s994_s3 }
 0x19d   : > { %p650_p9 = scmp.lt.u32.totalorder %s648_s8, %s644_s17  ;;  %p652_p6 = scmp.lt.u32.totalorder %s644_s17, %s948_s5 }
 0x19e   : > { %p646_p11 = pnand %p645_p10, %p1007_p12 }
 0x19f   : > { %p651_p2 = por %p650_p9, %p649_p3 }
 0x1a0   : > { %p647_p1 = pneg %p646_p11 }
 0x1a1   : > { %p653_p4 = por %p652_p6, %p651_p2 }
 0x1a3   : > { %p654_p5 = pnand %p653_p4, %p647_p1 }
 0x1a5   : > { %657 = shalt.err (!%p654_p5)
}
 0x1a6   : > { %510 = dma.vmem_to_hbm [thread:$0]  (%p1007_p12), %s950_s29, 16, %s948_s5, %s381_s16  }
 0x1a7 PF: > { %p524_p7 = scmp.ge.s32.totalorder %s700_s15, 2  ;;  %s405_s9 = sand.u32 1, %s688_s12  }
 0x1a8   : > { %p1008_p8 = scmp.ne.s32.totalorder %s1000_s25, 0  ;;  %s406_s22 = scalar_lea.sflag [#allocation4], %s405_s9 }
 0x1aa   : > { %p520_p13 = pnand %p524_p7, %p1008_p8 }
 0x1ac   : > { %683 = dma.done.wait (!%p520_p13), %s406_s22, 16  }
 0x1ad   : > { %685 = vsyncadd (!%p520_p13), %s406_s22, 4294967280  ;;  %p19_p0 = scmp.ge.s32.totalorder %s756_s18, 5   ;;  %s1009_s12 = smov %s692_s13 }
 0x1ae   : > { %s1010_s13 = smov %s696_s14  ;;  %s1011_s14 = smov %s768_s21 }
 0x1af   : > { %s1012_s15 = smov %s756_s18  ;;  %21 = sbr.rel (!%p19_p0) target bundleno = 7 (0x7), region = 90 }
 0x1b6   :  { %410 = vsyncpa [#allocation3], 1 }
 0x1b7   :  { %412 = vsyncpa [#allocation3 + $0x1], 1 }
 0x1b8   :  { %413 = vsyncpa [#allocation6], 1 }
 0x1b9   :  { %415 = vsyncpa [#allocation6 + $0x1], 1 }
 0x1ba   :  { %416 = vsyncpa [#allocation4], 1 }
 0x1bb   :  { %418 = vsyncpa [#allocation4 + $0x1], 1 }

</bundles_post_ra>
